<compile_context>
chip_gen: v7x
topology: tpu7x:2x2x1
jax: 0.10.0
libtpu: 0.0.40
codegen_flags: <defaults>
</compile_context>

<pallas_src>
import functools

import jax
import jax.numpy as jnp
from jax.experimental import pallas as pl
from jax.experimental.pallas import tpu as pltpu

_CLIP_MIN = 1e-05
_CLIP_MAX = 1e06

_TINY_FALLBACK_ELEMS = 1024  # below this, plain jnp (no pallas fixed cost)


def _mean_act_kernel(x_ref, o_ref, *, compute_dtype):
    # compute_dtype is f32 for f32 inputs (and on v5e / unknown chips);
    # bf16 inputs stay in bf16 on v6e/v7x (native bf16 VPU/EUP).
    x = x_ref[...].astype(compute_dtype)
    y = jnp.clip(jnp.exp(x), _CLIP_MIN, _CLIP_MAX)
    o_ref[...] = y.astype(o_ref.dtype)


def _round_up(a, b):
    return ((a + b - 1) // b) * b


def _sublane_min(dtype):
    # 8 rows for 4-byte dtypes, 16 for bf16/fp16, 32 for int8/fp8 so packed
    # sublane layouts are never split.
    itemsize = jnp.dtype(dtype).itemsize
    return max(8, 32 // max(1, itemsize))


def _pick_cols(n):
    # Largest lane-dense width (multiple of 128, capped at 4096) dividing n.
    for cols in (4096, 2048, 1024, 512, 256, 128):
        if n % cols == 0:
            return cols
    return None


def _device_kind():
    try:
        return jax.devices()[0].device_kind.lower()
    except Exception:
        return ""


def _max_block_bytes(kind, total_bytes):
    # v5e: 16 MiB default scoped VMEM -> 2 MiB blocks keep 2x(in)+2x(out)
    # double-buffering at 8 MiB + headroom.
    if "v5e" in kind or "v5 lite" in kind or "v5lite" in kind:
        return 2 << 20
    # v6e: 128 MiB physical VMEM; bigger blocks halve per-step overhead for
    # GB-scale inputs.  Do NOT carry this to v7x (64 MiB per-TC VMEM).
    if "v6" in kind and total_bytes >= (256 << 20):
        return 8 << 20
    return 4 << 20


def _compute_dtype_for(dtype, kind):
    if jnp.dtype(dtype) == jnp.bfloat16 and ("v6" in kind or "v7" in kind):
        return jnp.bfloat16
    return jnp.float32


def _mean_act_2d(x2d, out_dtype, *, max_block_bytes, compute_dtype):
    rows, cols = x2d.shape
    itemsize = jnp.dtype(x2d.dtype).itemsize
    sub = _sublane_min(x2d.dtype)
    n = rows * cols
    total_bytes = n * itemsize
    row_bytes = cols * itemsize

    # Largest sublane-aligned row count whose block stays under the VMEM cap.
    max_rows = max(sub, (max_block_bytes // row_bytes) // sub * sub)

    if rows <= sub or total_bytes < (1 << 20):
        # Small: single full block (block dims == full array dims, so no
        # (8,128) divisibility issue even for odd row counts).
        block_rows = rows
    else:
        # Medium/large: even number of >= 4 grid steps so each v7x TensorCore
        # gets >= 2 blocks (pipelined overlap + load balance), bounded by the
        # per-generation VMEM block cap.
        min_blocks = pl.cdiv(rows, max_rows)
        target = max(4, min_blocks)
        if target % 2:
            target += 1
        block_rows = min(max_rows, _round_up(pl.cdiv(rows, target), sub))
        # Nudge toward an even grid if sublane rounding made it odd.
        g = pl.cdiv(rows, block_rows)
        if 1 < g <= 16 and g % 2 == 1:
            br = block_rows
            for _ in range(8):
                br -= sub
                if br < sub:
                    break
                if pl.cdiv(rows, br) % 2 == 0:
                    block_rows = br
                    break

    block_bytes = block_rows * cols * itemsize
    # Explicit scoped-VMEM budget: 2x(in) + 2x(out) double buffers + headroom.
    vmem_limit = max(4 * block_bytes + (4 << 20), 16 << 20)

    kernel = functools.partial(_mean_act_kernel, compute_dtype=compute_dtype)

    return pl.pallas_call(
        kernel,
        out_shape=jax.ShapeDtypeStruct((rows, cols), out_dtype),
        grid_spec=pltpu.PrefetchScalarGridSpec(
            num_scalar_prefetch=0,
            grid=(pl.cdiv(rows, block_rows),),
            in_specs=[pl.BlockSpec((block_rows, cols), lambda i: (i, 0))],
            out_specs=pl.BlockSpec((block_rows, cols), lambda i: (i, 0)),
        ),
        compiler_params=pltpu.CompilerParams(
            dimension_semantics=("parallel",),
            vmem_limit_bytes=vmem_limit,
        ),
        cost_estimate=pl.CostEstimate(
            flops=0,
            transcendentals=n,
            bytes_accessed=n * itemsize + n * jnp.dtype(out_dtype).itemsize,
        ),
    )(x2d)


def _mean_act_jnp(x):
    # Tiny-input / tail fallback (a single fused XLA elementwise op).
    y = jnp.clip(jnp.exp(x.astype(jnp.float32)), _CLIP_MIN, _CLIP_MAX)
    return y.astype(x.dtype)


def mean_act(x):
    """clamp(exp(x), 1e-5, 1e6) via a Pallas TPU elementwise kernel."""
    orig_shape = x.shape
    orig_dtype = x.dtype
    n = x.size
    if n == 0:
        return x
    if n < _TINY_FALLBACK_ELEMS:
        return _mean_act_jnp(x)

    kind = _device_kind()
    total_bytes = n * jnp.dtype(orig_dtype).itemsize
    max_block_bytes = _max_block_bytes(kind, total_bytes)
    compute_dtype = _compute_dtype_for(orig_dtype, kind)

    cols = _pick_cols(n)
    if cols is not None:
        # Fast path: pure reshape into a lane-dense 2D slab, no extra copies.
        x2d = x.reshape(n // cols, cols)
        out2d = _mean_act_2d(x2d, orig_dtype,
                             max_block_bytes=max_block_bytes,
                             compute_dtype=compute_dtype)
        return out2d.reshape(orig_shape)

    # Slow path (size not a multiple of 128): kernel on the lane-aligned
    # prefix, plain jnp on the <128-element tail.  No whole-array pad/slice.
    flat = jnp.ravel(x)
    n_main = (n // 128) * 128
    cols = _pick_cols(n_main)
    main2d = _mean_act_2d(flat[:n_main].reshape(n_main // cols, cols),
                          orig_dtype,
                          max_block_bytes=max_block_bytes,
                          compute_dtype=compute_dtype)
    tail = _mean_act_jnp(flat[n_main:])
    out = jnp.concatenate([main2d.reshape(-1), tail])
    return out.reshape(orig_shape)


if __name__ == "__main__":
    key = jax.random.PRNGKey(0)
    k1, k2, k3, k4 = jax.random.split(key, 4)

    # 1) Module-shaped input (fast path, single lane-dense block).
    x1 = jax.random.normal(k1, (2, 4, 16, 16), dtype=jnp.float32) * 3.0
    y1 = mean_act(x1)
    jax.block_until_ready(y1)
    r1 = jnp.clip(jnp.exp(x1), _CLIP_MIN, _CLIP_MAX)
    assert y1.shape == x1.shape and y1.dtype == x1.dtype
    assert jnp.allclose(y1, r1, rtol=1e-6, atol=1e-6), "mismatch (module shape)"

    # 2) Medium f32 input -> even >=4-step "parallel" grid (megacore-friendly).
    x2 = jax.random.normal(k2, (512, 2048), dtype=jnp.float32) * 3.0
    y2 = mean_act(x2)
    jax.block_until_ready(y2)
    r2 = jnp.clip(jnp.exp(x2), _CLIP_MIN, _CLIP_MAX)
    assert jnp.allclose(y2, r2, rtol=1e-6, atol=1e-6), "mismatch (medium)"

    # 3) Ragged size (not a multiple of 128): kernel prefix + jnp tail.
    x3 = jax.random.normal(k3, (7, 37, 5), dtype=jnp.float32) * 3.0
    y3 = mean_act(x3)
    jax.block_until_ready(y3)
    r3 = jnp.clip(jnp.exp(x3), _CLIP_MIN, _CLIP_MAX)
    assert y3.shape == x3.shape and y3.dtype == x3.dtype
    assert jnp.allclose(y3, r3, rtol=1e-6, atol=1e-6), "mismatch (ragged)"

    # 4) bf16 input (native bf16 compute on v6e/v7x, f32 path elsewhere).
    x4 = (jax.random.normal(k4, (128, 256), dtype=jnp.float32) * 3.0
          ).astype(jnp.bfloat16)
    y4 = mean_act(x4)
    jax.block_until_ready(y4)
    r4 = jnp.clip(jnp.exp(x4.astype(jnp.float32)),
                  _CLIP_MIN, _CLIP_MAX).astype(jnp.bfloat16)
    assert y4.shape == x4.shape and y4.dtype == jnp.bfloat16
    assert jnp.allclose(y4.astype(jnp.float32), r4.astype(jnp.float32),
                        rtol=0.1, atol=1e-4), "mismatch (bf16)"

    print("KERNEL_OK")
</pallas_src>

<mosaic_0001>
module attributes {stable_mosaic.version = 11 : i64} {
  func.func @_mean_act_kernel(%arg0: i32, %arg1: memref<1x2048xf32, #tpu.memory_space<vmem>>, %arg2: memref<1x2048xf32, #tpu.memory_space<vmem>>) attributes {dimension_semantics = [#tpu.dimension_semantics<parallel>], iteration_bounds = array<i64: 1>, scalar_prefetch = 0 : i64, scratch_operands = 0 : i64, tpu.core_type = #tpu.core_type<tc>, window_params = [{transform_indices = @transform_0, window_bounds = array<i64: 1, 2048>}, {transform_indices = @transform_1, window_bounds = array<i64: 1, 2048>}]} {
    %c0 = arith.constant 0 : index
    %c0_0 = arith.constant 0 : index
    %0 = vector.load %arg1[%c0, %c0_0] : memref<1x2048xf32, #tpu.memory_space<vmem>>, vector<1x2048xf32>
    %1 = math.exp %0 : vector<1x2048xf32>
    %cst = arith.constant 9.99999974E-6 : f32
    %cst_1 = arith.constant 1.000000e+06 : f32
    %2 = vector.broadcast %cst : f32 to vector<1x2048xf32>
    %3 = arith.maximumf %2, %1 : vector<1x2048xf32>
    %4 = vector.broadcast %cst_1 : f32 to vector<1x2048xf32>
    %5 = arith.minimumf %4, %3 : vector<1x2048xf32>
    %c0_2 = arith.constant 0 : index
    %c0_3 = arith.constant 0 : index
    %6 = vector.load %arg2[%c0_2, %c0_3] : memref<1x2048xf32, #tpu.memory_space<vmem>>, vector<1x2048xf32>
    tpu.vector_store %arg2[%c0_2, %c0_3], %5 {strides = array<i32>} : memref<1x2048xf32, #tpu.memory_space<vmem>>, vector<1x2048xf32>,
    return
  }
  func.func @transform_0(%arg0: i32) -> (i32, i32) {
    %c0_i32 = arith.constant 0 : i32
    %c0_i32_0 = arith.constant 0 : i32
    return %arg0, %c0_i32 : i32, i32
  }
  func.func @transform_1(%arg0: i32) -> (i32, i32) {
    %c0_i32 = arith.constant 0 : i32
    %c0_i32_0 = arith.constant 0 : i32
    return %arg0, %c0_i32 : i32, i32
  }
}

</mosaic_0001>

<bundles_post_ra>
// kernel: tpu_custom_call.1
= control target key start
LH: loop header
LB: loop body
LE: loop exit
PB: predicated region body
PF: predicated region fallthrough
CT: control target
= control target key end

     0   :  { %6 = vsyncpa [#allocation3], 0  ;;  %s138_s0 = inlined_call_operand.hbm [shape: f32[1,2048], index: 0, kind: input, shape index: {}]   ;;  %s139_s1 = inlined_call_operand.hbm [shape: f32[1,2048], index: 1, kind: output, shape index: {}]  }
   0x1   :  { %7 = vsyncpa [#allocation4], 0  ;;  %s102_s6 = smov [#allocation2]   ;;  %s54_s10 = scalar_lea.hbm %s138_s0, 256 }
   0x2   :  { %s14_s7 = sshll.u32 %s102_s6, 4  ;;  %p55_p0 = scmp.ne.s32.totalorder %s138_s0, %s54_s10  ;;  %s15_s7 = int_to_ptr.vmem [resolvable:$true] %s14_s7 }
   0x3   :  { %p58_p1 = scmp.lt.u32.totalorder %s54_s10, %s138_s0 }
   0x5   :  { %p60_p2 = pnand %p58_p1, %p55_p0 }
   0x7   :  { %63 = shalt.err (!%p60_p2)
}
   0x8   :  { %s64_s15 = scalar_lea.vmem %s15_s7, 256  ;;  %p69_p4 = scmp.lt.s32.totalorder %s15_s7, %s15_s7 }
   0x9   :  { %p65_p3 = scmp.ne.s32.totalorder %s15_s7, %s64_s15  ;;  %p70_p5 = scmp.lt.s32.totalorder %s64_s15, %s64_s15 }
   0xb   :  { %p71_p6 = por %p70_p5, %p69_p4 }
   0xd   :  { %p72_p7 = pnand %p71_p6, %p65_p3 }
   0xf   :  { %75 = shalt.err (!%p72_p7)
}
  0x10   :  { %17 = dma.hbm_to_vmem [thread:$0]  %s138_s0, 256, %s15_s7, [#allocation3]  }
  0x11   :  { %98 = dma.done.wait [#allocation3], 256  }
  0x12   :  { %99 = vsyncadd [#allocation3], 4294967040  ;;  %v21_v0 = vld [vmem:[#allocation2] sm:$0xff]  ;;  %v22_v1 = vld [vmem:[#allocation2 + $0x8] sm:$0xff]  ;;  %s103_s18 = smov [#allocation5]  }
  0x13   :  { %v23_v2 = vmul.f32 1.442695, %v21_v0  ;;  %v25_v3 = vmul.f32 1.442695, %v22_v1  ;;  %s39_s19 = sshll.u32 %s103_s18, 4  ;;  %s40_s19 = int_to_ptr.vmem [resolvable:$true] %s39_s19 }
  0x14   :  { %s76_s0 = scalar_lea.vmem %s40_s19, 256  ;;  %p81_p9 = scmp.lt.s32.totalorder %s40_s19, %s40_s19 }
  0x15   :  { %50 = vpow2.f32 %v23_v2  ;;  %p77_p8 = scmp.ne.s32.totalorder %s40_s19, %s76_s0  ;;  %p82_p10 = scmp.lt.s32.totalorder %s76_s0, %s76_s0 }
  0x16   :  { %52 = vpow2.f32 %v25_v3 }
  0x17   :  { %p83_p11 = por %p82_p10, %p81_p9 }
  0x19   :  { %p84_p12 = pnand %p83_p11, %p77_p8 }
  0x1f   :  { %v51_v4 = vpop.eup %50 }
  0x20   :  { %v53_v5 = vpop.eup %52  ;;  %v27_v6 = vmax.f32 %v51_v4, 1e-05 }
  0x21   :  { %v28_v7 = vmax.f32 %v53_v5, 1e-05 }
  0x22   :  { %v29_v8 = vmin.f32 %v27_v6, 1000000.0 }
  0x23   :  { %v30_v9 = vmin.f32 %v28_v7, 1000000.0 }
  0x24   :  { %31 = vst [vmem:[#allocation5] sm:$0xff] %v29_v8 }
  0x25   :  { %32 = vst [vmem:[#allocation5 + $0x8] sm:$0xff] %v30_v9 }
  0x26   :  { %87 = shalt.err (!%p84_p12)
}
  0x27   :  { %s88_s22 = scalar_lea.hbm %s139_s1, 256 }
  0x28   :  { %p89_p13 = scmp.ne.s32.totalorder %s139_s1, %s88_s22  ;;  %p92_p0 = scmp.lt.u32.totalorder %s88_s22, %s139_s1 }
  0x2a   :  { %p94_p1 = pnand %p92_p0, %p89_p13 }
  0x2c   :  { %97 = shalt.err (!%p94_p1)
}
  0x2d   :  { %42 = dma.vmem_to_hbm [thread:$0]  %s40_s19, 256, %s139_s1, [#allocation4]  }
  0x2e   :  { %100 = dma.done.wait [#allocation4], 256  }
  0x2f   :  { %101 = vsyncadd [#allocation4], 4294967040 }
  0x30   :  { %46 = vsyncpa [#allocation3], 1 }
  0x31   :  { %47 = vsyncpa [#allocation4], 1 }

</bundles_post_ra>
